<compile_context>
chip_gen: v6e
topology: v6e:2x2x1
jax: 0.10.0
libtpu: 0.0.40
codegen_flags: <defaults>
</compile_context>

<pallas_src>
import jax
import jax.numpy as jnp
from jax.experimental import pallas as pl
from jax.experimental.pallas import tpu as pltpu


def _round_up(x, m):
    return (x + m - 1) // m * m


def _pick_batch_tile(b_pad128):
    """Pick the batch tile.

    The batch is the lane axis of the transposed output, so tiles must be multiples of
    128 (b_pad128 already is).  Trade round-up padding waste (each padded row costs full
    obs-read + output-write HBM bandwidth) against the ~0.35us fixed per-grid-step
    overhead (worth a few hundred rows of HBM time), and keep >=2 grid steps when cheap
    so v7x's second TensorCore has work on the "parallel" batch axis.
    """
    if b_pad128 <= 1024:
        return b_pad128 // 2 if b_pad128 % 256 == 0 else b_pad128
    best_tb, best_score = None, None
    for tb in (2048, 1024, 512, 256, 128):
        steps = pl.cdiv(b_pad128, tb)
        waste = steps * tb - b_pad128
        score = (waste + 512 * steps, -tb)   # padded rows + per-step overhead (in rows)
        if best_score is None or score < best_score:
            best_score, best_tb = score, tb
    return best_tb


def _make_policy_kernel(n_obs):
    """Fused policy kernel for `n_obs` observation streams.

    Ref order: f_0..f_{n-1}, w1_0..w1_{n-1}, b1, w2, b2, wa_t, ba_t, act_t_out
    """

    def kernel(*refs):
        f_refs = refs[:n_obs]
        w1_refs = refs[n_obs:2 * n_obs]
        b1_ref, w2_ref, b2_ref, wa_t_ref, ba_t_ref, act_ref = refs[2 * n_obs:]

        # features_extractor (CombinedExtractor): the per-key flatten happens in the
        # wrapper; the cross-key concat is folded in by splitting w1 along its input
        # axis, so layer 1 is a sum of MXU pushes into one f32 accumulator.  Obs are
        # read as f32 and cast to bf16 on the VPU here (no wrapper-side cast pass).
        acc = jnp.dot(f_refs[0][...].astype(jnp.bfloat16), w1_refs[0][...],
                      preferred_element_type=jnp.float32)
        for i in range(1, n_obs):
            acc = acc + jnp.dot(f_refs[i][...].astype(jnp.bfloat16), w1_refs[i][...],
                                preferred_element_type=jnp.float32)

        # mlp_extractor policy branch: Linear -> tanh -> Linear -> tanh
        # First tanh on bf16 (EUP bf16 path on v6e/v7x; it feeds a bf16 dot anyway).
        h1 = jnp.tanh((acc + b1_ref[...]).astype(jnp.bfloat16))            # (tb, H) bf16
        # Second tanh kept in f32 so the transpose below is a plain 32-bit XLU transpose.
        h2 = jnp.tanh(jnp.dot(h1, w2_ref[...],
                              preferred_element_type=jnp.float32) + b2_ref[...])

        # action_net: Linear, computed transposed so the batch sits on the lane axis and
        # the store is lane-dense without 128-column output padding.
        h2_t = h2.T.astype(jnp.bfloat16)                                   # (H, tb) bf16
        act_ref[...] = (jnp.dot(wa_t_ref[...], h2_t,
                                preferred_element_type=jnp.float32)        # (a_pad8, tb)
                        + ba_t_ref[...])

    return kernel


def prepare_params(params, obs_dims):
    """One-time weight prep, hoisted out of the forward path.

    bf16 MXU operands (f32 accumulation), w1 split at the per-obs concat boundaries,
    action head stored transposed and sublane-padded to a multiple of 8 rows.
    """
    obs_dims = tuple(int(d) for d in obs_dims)
    H = int(params["w1"].shape[1])
    act_dim = int(params["wa"].shape[1])
    a_pad8 = _round_up(act_dim, 8)

    w1 = params["w1"].astype(jnp.bfloat16)
    offs = [0]
    for d in obs_dims:
        offs.append(offs[-1] + d)
    w1_parts = tuple(w1[offs[i]:offs[i + 1], :] for i in range(len(obs_dims)))

    wa_t = jnp.pad(params["wa"].T.astype(jnp.bfloat16),
                   ((0, a_pad8 - act_dim), (0, 0)))                 # (a_pad8, H) bf16
    ba_t = jnp.pad(params["ba"].T.astype(jnp.float32),
                   ((0, a_pad8 - act_dim), (0, 0)))                 # (a_pad8, 1) f32

    return {
        "w1_parts": w1_parts,
        "b1": params["b1"].astype(jnp.float32),
        "w2": params["w2"].astype(jnp.bfloat16),
        "b2": params["b2"].astype(jnp.float32),
        "wa_t": wa_t,
        "ba_t": ba_t,
        "hidden": H,
        "act_dim": act_dim,
        "a_pad8": a_pad8,
        "obs_dims": obs_dims,
    }


def onnxable_multi_input_policy(obs, state_ins, prepared):
    """Forward pass of OnnxableMultiInputPolicy.

    obs:       list of (B, ...) float32 arrays (order matches obs_keys)
    state_ins: passthrough array (returned unchanged)
    prepared:  output of prepare_params()
    """
    # CombinedExtractor's per-key Flatten; concat is folded into the kernel via w1 split.
    flats = [o.reshape(o.shape[0], -1) for o in obs]
    n_obs = len(flats)
    B = flats[0].shape[0]
    obs_dims = prepared["obs_dims"]
    assert tuple(int(f.shape[1]) for f in flats) == obs_dims

    H = prepared["hidden"]
    act_dim = prepared["act_dim"]
    a_pad8 = prepared["a_pad8"]
    feat_dim = sum(obs_dims)

    # Batch padded to a multiple of 128 (lane axis of the transposed output), then tiled.
    b_pad128 = _round_up(max(B, 1), 128)
    tb = _pick_batch_tile(b_pad128)
    b_pad = _round_up(b_pad128, tb)
    if b_pad != B:
        flats = [jnp.pad(f, ((0, b_pad - B), (0, 0))) for f in flats]
    grid = (b_pad // tb,)

    in_specs = (
        [pl.BlockSpec((tb, d), lambda i: (i, 0)) for d in obs_dims]      # obs tiles (f32)
        + [pl.BlockSpec((d, H), lambda i: (0, 0)) for d in obs_dims]     # w1 slices (bf16)
        + [pl.BlockSpec((1, H), lambda i: (0, 0)),                       # b1
           pl.BlockSpec((H, H), lambda i: (0, 0)),                       # w2
           pl.BlockSpec((1, H), lambda i: (0, 0)),                       # b2
           pl.BlockSpec((a_pad8, H), lambda i: (0, 0)),                  # wa^T (padded)
           pl.BlockSpec((a_pad8, 1), lambda i: (0, 0))]                  # ba^T (padded)
    )
    out_spec = pl.BlockSpec((a_pad8, tb), lambda i: (0, i))              # transposed out

    cost = pl.CostEstimate(
        flops=2 * b_pad * (feat_dim * H + H * H + H * a_pad8),
        transcendentals=2 * b_pad * H,
        bytes_accessed=(b_pad * feat_dim * 4                       # obs streams (f32)
                        + (feat_dim * H + H * H + a_pad8 * H) * 2  # weights (bf16)
                        + (2 * H + a_pad8) * 4                     # biases (f32)
                        + a_pad8 * b_pad * 4),                     # transposed actions
    )

    act_t = pl.pallas_call(
        _make_policy_kernel(n_obs),
        out_shape=jax.ShapeDtypeStruct((a_pad8, b_pad), jnp.float32),
        grid=grid,
        in_specs=in_specs,
        out_specs=out_spec,
        compiler_params=pltpu.CompilerParams(dimension_semantics=("parallel",)),
        cost_estimate=cost,
    )(*flats, *prepared["w1_parts"], prepared["b1"], prepared["w2"],
      prepared["b2"], prepared["wa_t"], prepared["ba_t"])

    actions = act_t[:act_dim, :B].T   # tiny (act_dim, B) slice + transpose in the wrapper

    # TODO(synk): value branch (mlp_extractor value head + value_net) is computed by the
    # original module but unused in forward's return value, so it is omitted here; if it
    # is ever needed, fuse it as an extra output of the same kernel (shared trunk in VMEM).
    return actions, state_ins


def _init_params(key, feat_dim, hidden_dim, act_dim):
    ks = jax.random.split(key, 6)
    scale = 0.05
    return {
        "w1": scale * jax.random.normal(ks[0], (feat_dim, hidden_dim), jnp.float32),
        "b1": scale * jax.random.normal(ks[1], (1, hidden_dim), jnp.float32),
        "w2": scale * jax.random.normal(ks[2], (hidden_dim, hidden_dim), jnp.float32),
        "b2": scale * jax.random.normal(ks[3], (1, hidden_dim), jnp.float32),
        "wa": scale * jax.random.normal(ks[4], (hidden_dim, act_dim), jnp.float32),
        "ba": scale * jax.random.normal(ks[5], (1, act_dim), jnp.float32),
    }


if __name__ == "__main__":
    key = jax.random.PRNGKey(0)
    k_obs0, k_obs1, k_state, k_params = jax.random.split(key, 4)

    # Two observation streams ("obs" keys); the second is multi-dim to exercise the
    # per-key flatten of CombinedExtractor.
    B = 8
    obs0 = jax.random.normal(k_obs0, (B, 64), jnp.float32)      # e.g. "sensors"
    obs1 = jax.random.normal(k_obs1, (B, 8, 8), jnp.float32)    # e.g. "camera" -> flattens to 64
    obs = [obs0, obs1]
    obs_keys = ["sensors", "camera"]  # noqa: F841  (kept for parity with the module)

    state_ins = jnp.zeros((B, 1), jnp.float32)  # recurrent-state passthrough

    feat_dim = 64 + 64      # flatten + concat
    hidden_dim = 128        # mlp_extractor hidden size
    act_dim = 8             # action_net output size

    params = _init_params(k_params, feat_dim, hidden_dim, act_dim)
    prepared = prepare_params(params, obs_dims=[64, 64])   # one-time weight prep

    actions, state_out = onnxable_multi_input_policy(obs, state_ins, prepared)
    jax.block_until_ready(actions)
    jax.block_until_ready(state_out)

    # Pure-JAX f32 reference. The kernel runs bf16 MXU operands (f32 accumulation),
    # so the tolerance is loosened accordingly.
    feats = jnp.concatenate([o.reshape(B, -1) for o in obs], axis=-1)
    h1 = jnp.tanh(feats @ params["w1"] + params["b1"])
    h2 = jnp.tanh(h1 @ params["w2"] + params["b2"])
    ref = h2 @ params["wa"] + params["ba"]

    assert actions.shape == (B, act_dim)
    assert jnp.allclose(actions, ref, atol=3e-2, rtol=3e-2), float(
        jnp.max(jnp.abs(actions - ref)))
    assert jnp.array_equal(state_out, state_ins)

    print("KERNEL_OK")
</pallas_src>

<mosaic_0001>
module attributes {stable_mosaic.version = 11 : i64} {
  func.func @kernel(%arg0: i32, %arg1: memref<128x64xf32, #tpu.memory_space<vmem>>, %arg2: memref<128x64xf32, #tpu.memory_space<vmem>>, %arg3: memref<64x128xbf16, #tpu.memory_space<vmem>>, %arg4: memref<64x128xbf16, #tpu.memory_space<vmem>>, %arg5: memref<1x128xf32, #tpu.memory_space<vmem>>, %arg6: memref<128x128xbf16, #tpu.memory_space<vmem>>, %arg7: memref<1x128xf32, #tpu.memory_space<vmem>>, %arg8: memref<8x128xbf16, #tpu.memory_space<vmem>>, %arg9: memref<8x1xf32, #tpu.memory_space<vmem>>, %arg10: memref<8x128xf32, #tpu.memory_space<vmem>>) attributes {dimension_semantics = [#tpu.dimension_semantics<parallel>], iteration_bounds = array<i64: 1>, scalar_prefetch = 0 : i64, scratch_operands = 0 : i64, tpu.core_type = #tpu.core_type<tc>, window_params = [{transform_indices = @transform_0, window_bounds = array<i64: 128, 64>}, {transform_indices = @transform_1, window_bounds = array<i64: 128, 64>}, {pipeline_mode = #tpu.pipeline_mode<synchronous>, transform_indices = @transform_2, window_bounds = array<i64: 64, 128>}, {pipeline_mode = #tpu.pipeline_mode<synchronous>, transform_indices = @transform_3, window_bounds = array<i64: 64, 128>}, {pipeline_mode = #tpu.pipeline_mode<synchronous>, transform_indices = @transform_4, window_bounds = array<i64: 1, 128>}, {pipeline_mode = #tpu.pipeline_mode<synchronous>, transform_indices = @transform_5, window_bounds = array<i64: 128, 128>}, {pipeline_mode = #tpu.pipeline_mode<synchronous>, transform_indices = @transform_6, window_bounds = array<i64: 1, 128>}, {pipeline_mode = #tpu.pipeline_mode<synchronous>, transform_indices = @transform_7, window_bounds = array<i64: 8, 128>}, {pipeline_mode = #tpu.pipeline_mode<synchronous>, transform_indices = @transform_8, window_bounds = array<i64: 8, 1>}, {transform_indices = @transform_9, window_bounds = array<i64: 8, 128>}]} {
    %c0 = arith.constant 0 : index
    %c0_0 = arith.constant 0 : index
    %0 = vector.load %arg1[%c0, %c0_0] : memref<128x64xf32, #tpu.memory_space<vmem>>, vector<128x64xf32>
    %1 = arith.truncf %0 : vector<128x64xf32> to vector<128x64xbf16>
    %c0_1 = arith.constant 0 : index
    %c0_2 = arith.constant 0 : index
    %2 = vector.load %arg3[%c0_1, %c0_2] : memref<64x128xbf16, #tpu.memory_space<vmem>>, vector<64x128xbf16>
    %cst = arith.constant dense<0.000000e+00> : vector<128x128xf32>
    %3 = tpu.matmul %1, %2, %cst {dimension_numbers = #tpu.dot_dimension_numbers<[1], [0], [0], [1], [0, 0, 1, 1], [], []>} : vector<128x64xbf16>, vector<64x128xbf16>, vector<128x128xf32> -> vector<128x128xf32>
    %c0_3 = arith.constant 0 : index
    %c0_4 = arith.constant 0 : index
    %4 = vector.load %arg2[%c0_3, %c0_4] : memref<128x64xf32, #tpu.memory_space<vmem>>, vector<128x64xf32>
    %5 = arith.truncf %4 : vector<128x64xf32> to vector<128x64xbf16>
    %c0_5 = arith.constant 0 : index
    %c0_6 = arith.constant 0 : index
    %6 = vector.load %arg4[%c0_5, %c0_6] : memref<64x128xbf16, #tpu.memory_space<vmem>>, vector<64x128xbf16>
    %cst_7 = arith.constant dense<0.000000e+00> : vector<128x128xf32>
    %7 = tpu.matmul %5, %6, %cst_7 {dimension_numbers = #tpu.dot_dimension_numbers<[1], [0], [0], [1], [0, 0, 1, 1], [], []>} : vector<128x64xbf16>, vector<64x128xbf16>, vector<128x128xf32> -> vector<128x128xf32>
    %8 = arith.addf %3, %7 : vector<128x128xf32>
    %c0_8 = arith.constant 0 : index
    %c0_9 = arith.constant 0 : index
    %9 = vector.load %arg5[%c0_8, %c0_9] : memref<1x128xf32, #tpu.memory_space<vmem>>, vector<1x128xf32>
    %10 = vector.broadcast %9 : vector<1x128xf32> to vector<128x128xf32>
    %11 = arith.addf %8, %10 : vector<128x128xf32>
    %12 = arith.truncf %11 : vector<128x128xf32> to vector<128x128xbf16>
    %13 = math.tanh %12 : vector<128x128xbf16>
    %c0_10 = arith.constant 0 : index
    %c0_11 = arith.constant 0 : index
    %14 = vector.load %arg6[%c0_10, %c0_11] : memref<128x128xbf16, #tpu.memory_space<vmem>>, vector<128x128xbf16>
    %cst_12 = arith.constant dense<0.000000e+00> : vector<128x128xf32>
    %15 = tpu.matmul %13, %14, %cst_12 {dimension_numbers = #tpu.dot_dimension_numbers<[1], [0], [0], [1], [0, 0, 1, 1], [], []>} : vector<128x128xbf16>, vector<128x128xbf16>, vector<128x128xf32> -> vector<128x128xf32>
    %c0_13 = arith.constant 0 : index
    %c0_14 = arith.constant 0 : index
    %16 = vector.load %arg7[%c0_13, %c0_14] : memref<1x128xf32, #tpu.memory_space<vmem>>, vector<1x128xf32>
    %17 = vector.broadcast %16 : vector<1x128xf32> to vector<128x128xf32>
    %18 = arith.addf %15, %17 : vector<128x128xf32>
    %19 = math.tanh %18 : vector<128x128xf32>
    %20 = tpu.transpose %19, [1, 0] : vector<128x128xf32> -> vector<128x128xf32>
    %21 = arith.truncf %20 : vector<128x128xf32> to vector<128x128xbf16>
    %c0_15 = arith.constant 0 : index
    %c0_16 = arith.constant 0 : index
    %22 = vector.load %arg8[%c0_15, %c0_16] : memref<8x128xbf16, #tpu.memory_space<vmem>>, vector<8x128xbf16>
    %cst_17 = arith.constant dense<0.000000e+00> : vector<8x128xf32>
    %23 = tpu.matmul %22, %21, %cst_17 {dimension_numbers = #tpu.dot_dimension_numbers<[1], [0], [0], [1], [0, 0, 1, 1], [], []>} : vector<8x128xbf16>, vector<128x128xbf16>, vector<8x128xf32> -> vector<8x128xf32>
    %c0_18 = arith.constant 0 : index
    %c0_19 = arith.constant 0 : index
    %24 = vector.load %arg9[%c0_18, %c0_19] : memref<8x1xf32, #tpu.memory_space<vmem>>, vector<8x1xf32>
    %25 = vector.broadcast %24 : vector<8x1xf32> to vector<8x128xf32>
    %26 = arith.addf %23, %25 : vector<8x128xf32>
    %c0_20 = arith.constant 0 : index
    %c0_21 = arith.constant 0 : index
    %27 = vector.load %arg10[%c0_20, %c0_21] : memref<8x128xf32, #tpu.memory_space<vmem>>, vector<8x128xf32>
    tpu.vector_store %arg10[%c0_20, %c0_21], %26 {strides = array<i32>} : memref<8x128xf32, #tpu.memory_space<vmem>>, vector<8x128xf32>,
    return
  }
  func.func @transform_0(%arg0: i32) -> (i32, i32) {
    %c0_i32 = arith.constant 0 : i32
    %c0_i32_0 = arith.constant 0 : i32
    return %arg0, %c0_i32 : i32, i32
  }
  func.func @transform_1(%arg0: i32) -> (i32, i32) {
    %c0_i32 = arith.constant 0 : i32
    %c0_i32_0 = arith.constant 0 : i32
    return %arg0, %c0_i32 : i32, i32
  }
  func.func @transform_2(%arg0: i32) -> (i32, i32) {
    %c0_i32 = arith.constant 0 : i32
    %c0_i32_0 = arith.constant 0 : i32
    %c0_i32_1 = arith.constant 0 : i32
    return %c0_i32, %c0_i32_0 : i32, i32
  }
  func.func @transform_3(%arg0: i32) -> (i32, i32) {
    %c0_i32 = arith.constant 0 : i32
    %c0_i32_0 = arith.constant 0 : i32
    %c0_i32_1 = arith.constant 0 : i32
    return %c0_i32, %c0_i32_0 : i32, i32
  }
  func.func @transform_4(%arg0: i32) -> (i32, i32) {
    %c0_i32 = arith.constant 0 : i32
    %c0_i32_0 = arith.constant 0 : i32
    %c0_i32_1 = arith.constant 0 : i32
    return %c0_i32, %c0_i32_0 : i32, i32
  }
  func.func @transform_5(%arg0: i32) -> (i32, i32) {
    %c0_i32 = arith.constant 0 : i32
    %c0_i32_0 = arith.constant 0 : i32
    %c0_i32_1 = arith.constant 0 : i32
    return %c0_i32, %c0_i32_0 : i32, i32
  }
  func.func @transform_6(%arg0: i32) -> (i32, i32) {
    %c0_i32 = arith.constant 0 : i32
    %c0_i32_0 = arith.constant 0 : i32
    %c0_i32_1 = arith.constant 0 : i32
    return %c0_i32, %c0_i32_0 : i32, i32
  }
  func.func @transform_7(%arg0: i32) -> (i32, i32) {
    %c0_i32 = arith.constant 0 : i32
    %c0_i32_0 = arith.constant 0 : i32
    %c0_i32_1 = arith.constant 0 : i32
    return %c0_i32, %c0_i32_0 : i32, i32
  }
  func.func @transform_8(%arg0: i32) -> (i32, i32) {
    %c0_i32 = arith.constant 0 : i32
    %c0_i32_0 = arith.constant 0 : i32
    %c0_i32_1 = arith.constant 0 : i32
    return %c0_i32, %c0_i32_0 : i32, i32
  }
  func.func @transform_9(%arg0: i32) -> (i32, i32) {
    %c0_i32 = arith.constant 0 : i32
    %c0_i32_0 = arith.constant 0 : i32
    return %c0_i32, %arg0 : i32, i32
  }
}

</mosaic_0001>

<bundles_post_ra>
// kernel: tpu_custom_call.1
= control target key start
LH: loop header
LB: loop body
LE: loop exit
PB: predicated region body
PF: predicated region fallthrough
CT: control target
= control target key end

     0   :  { %vm122_vm0 = vcmask 523264   ;;  %s1254_s0 = inlined_call_operand.vmem [shape: f32[128,64], index: 0, kind: input, shape index: {}]   ;;  %s1255_s1 = inlined_call_operand.vmem [shape: f32[128,64], index: 1, kind: input, shape index: {}]   ;;  %s1256_s2 = inlined_call_operand.vmem [shape: bf16[64,128], index: 2, kind: input, shape index: {}]   ;;  %s1257_s3 = inlined_call_operand.vmem [shape: bf16[64,128], index: 3, kind: input, shape index: {}]   ;;  %s1258_s4 = inlined_call_operand.vmem [shape: f32[1,128], index: 4, kind: input, shape index: {}]   ;;  %s1259_s5 = inlined_call_operand.vmem [shape: bf16[128,128], index: 5, kind: input, shape index: {}]   ;;  %s1260_s6 = inlined_call_operand.vmem [shape: f32[1,128], index: 6, kind: input, shape index: {}]   ;;  %s1261_s7 = inlined_call_operand.vmem [shape: bf16[8,128], index: 7, kind: input, shape index: {}]   ;;  %s1262_s8 = inlined_call_operand.vmem [shape: f32[8,1], index: 8, kind: input, shape index: {}]   ;;  %s1263_s9 = inlined_call_operand.hbm [shape: f32[8,128], index: 9, kind: output, shape index: {}]  }
   0x1   :  { %v903_v0 = vld [vmem:[%s1257_s3 + $0x18] sm:$0xff]   ;;  %v905_v2 = vld [vmem:[%s1257_s3 + $0x10] sm:$0xff]   ;;  %v907_v4 = vld [vmem:[%s1257_s3 + $0x8] sm:$0xff]  }
   0x2   :  { %v904_v1 = vld [vmem:[%s1256_s2 + $0x18] sm:$0xff]   ;;  %797 = vmatprep.subr.bf16.mxu0 %v903_v0  ;;  %v906_v3 = vld [vmem:[%s1256_s2 + $0x10] sm:$0xff]   ;;  %v908_v5 = vld [vmem:[%s1256_s2 + $0x8] sm:$0xff]  }
   0x3   :  { %821 = vmatprep.subr.bf16.mxu1 %v904_v1  ;;  %798 = vmatpush3.bf16.msra.mxu0 %v903_v0  ;;  %v909_v6 = vld [vmem:[%s1257_s3] sm:$0xff]   ;;  %v67_v8 = vld [vmem:[%s1255_s1 + $0x8] sm:$0xff]  ;;  %v68_v14 = vld [vmem:[%s1255_s1 + $0x10] sm:$0xff] }
   0x4   :  { %822 = vmatpush3.bf16.msra.mxu1 %v904_v1  ;;  %799 = vmatprep.subr.bf16.mxu0 %v905_v2  ;;  %v66_v7 = vld [vmem:[%s1255_s1] sm:$0xff]  ;;  %v35_v12 = vld [vmem:[%s1254_s0 + $0x8] sm:$0xff]  ;;  %v69_v15 = vld [vmem:[%s1255_s1 + $0x18] sm:$0xff] }
   0x5   :  { %823 = vmatprep.subr.bf16.mxu1 %v906_v3  ;;  %v34_v9 = vld [vmem:[%s1254_s0] sm:$0xff]  ;;  %v82_v11 = vpack.c.bf16 %v67_v8, %v66_v7  ;;  %v36_v16 = vld [vmem:[%s1254_s0 + $0x10] sm:$0xff]  ;;  %v37_v17 = vld [vmem:[%s1254_s0 + $0x18] sm:$0xff]  ;;  %v83_v22 = vpack.c.bf16 %v69_v15, %v68_v14 }
   0x6   :  { %v910_v10 = vld [vmem:[%s1256_s2] sm:$0xff]   ;;  %v50_v13 = vpack.c.bf16 %v35_v12, %v34_v9  ;;  %v71_v19 = vld [vmem:[%s1255_s1 + $0x28] sm:$0xff]  ;;  %v51_v23 = vpack.c.bf16 %v37_v17, %v36_v16  ;;  %v72_v26 = vld [vmem:[%s1255_s1 + $0x30] sm:$0xff] }
   0x7   :  { %800 = vmatpush3.bf16.msra.mxu0 %v905_v2  ;;  %805 = vmatprep.mubr.msk.bf16.mxu0 %vm122_vm0, %v82_v11  ;;  %v70_v18 = vld [vmem:[%s1255_s1 + $0x20] sm:$0xff]  ;;  %v39_v21 = vld [vmem:[%s1254_s0 + $0x28] sm:$0xff]  ;;  %v73_v27 = vld [vmem:[%s1255_s1 + $0x38] sm:$0xff] }
   0x8   :  { %824 = vmatpush3.bf16.msra.mxu1 %v906_v3  ;;  %801 = vmatprep.subr.bf16.mxu0 %v907_v4  ;;  %v38_v20 = vld [vmem:[%s1254_s0 + $0x20] sm:$0xff]  ;;  %v84_v24 = vpack.c.bf16 %v71_v19, %v70_v18  ;;  %v40_v28 = vld [vmem:[%s1254_s0 + $0x30] sm:$0xff]  ;;  %v41_v29 = vld [vmem:[%s1254_s0 + $0x38] sm:$0xff]  ;;  %v85_v35 = vpack.c.bf16 %v73_v27, %v72_v26 }
   0x9   :  { %825 = vmatprep.subr.bf16.mxu1 %v908_v5  ;;  %829 = vmatprep.mubr.msk.bf16.mxu1 %vm122_vm0, %v50_v13  ;;  %v52_v25 = vpack.c.bf16 %v39_v21, %v38_v20  ;;  %v74_v30 = vld [vmem:[%s1255_s1 + $0x40] sm:$0xff]  ;;  %v75_v31 = vld [vmem:[%s1255_s1 + $0x48] sm:$0xff]  ;;  %v911_v34 = vld [vmem:[%s1259_s5 + $0x38] sm:$0xff]   ;;  %v53_v36 = vpack.c.bf16 %v41_v29, %v40_v28 }
   0xa   :  { %v42_v32 = vld [vmem:[%s1254_s0 + $0x40] sm:$0xff]  ;;  %v43_v33 = vld [vmem:[%s1254_s0 + $0x48] sm:$0xff]  ;;  %v86_v37 = vpack.c.bf16 %v75_v31, %v74_v30 }
   0xb   :  { %802 = vmatpush3.bf16.msra.mxu0 %v907_v4  ;;  %v54_v38 = vpack.c.bf16 %v43_v33, %v42_v32 }
   0xc   :  { %826 = vmatpush3.bf16.msra.mxu1 %v908_v5  ;;  %803 = vmatprep.subr.bf16.mxu0 %v909_v6 }
   0xd   :  { %827 = vmatprep.subr.bf16.mxu1 %v910_v10 }
   0xf   :  { %804 = vmatpush3.bf16.msra.mxu0 %v909_v6 }
  0x10   :  { %828 = vmatpush3.bf16.msra.mxu1 %v910_v10  ;;  %845 = vmatprep.subr.bf16.mxu0 %v911_v34 }
  0x12   :  { %806 = vmatmul.mubr.msk.bf16.vlgmr.msra.gmra.mxu0 %vm122_vm0, %v83_v22 }
  0x13   :  { %830 = vmatmul.mubr.msk.bf16.vlgmr.msra.gmra.mxu1 %vm122_vm0, %v51_v23  ;;  %809 = vmatprep.mubr.msk.bf16.mxu0 %vm122_vm0, %v84_v24 }
  0x14   :  { %833 = vmatprep.mubr.msk.bf16.mxu1 %vm122_vm0, %v52_v25  ;;  %846 = vmatpush3.bf16.msra.mxu0 %v911_v34 }
  0x15   :  { %14 = vsyncpa [#allocation3], 0  ;;  %v76_v39 = vld [vmem:[%s1255_s1 + $0x50] sm:$0xff]  ;;  %v77_v40 = vld [vmem:[%s1255_s1 + $0x58] sm:$0xff]  ;;  %vm990_vm1 = vmmov 0   ;;  %s992_s16 = smov [#allocation2]  }
  0x16   :  { %v44_v41 = vld [vmem:[%s1254_s0 + $0x50] sm:$0xff]  ;;  %v45_v42 = vld [vmem:[%s1254_s0 + $0x58] sm:$0xff]  ;;  %v78_v43 = vld [vmem:[%s1255_s1 + $0x60] sm:$0xff]  ;;  %v87_v47 = vpack.c.bf16 %v77_v40, %v76_v39  ;;  %s706_s2 = sshll.u32 %s992_s16, 4  ;;  %s707_s2 = int_to_ptr.vmem [resolvable:$true] %s706_s2 }
  0x17   :  { %v79_v44 = vld [vmem:[%s1255_s1 + $0x68] sm:$0xff]  ;;  %v46_v45 = vld [vmem:[%s1254_s0 + $0x60] sm:$0xff]  ;;  %v55_v48 = vpack.c.bf16 %v45_v42, %v44_v41  ;;  %v80_v51 = vld [vmem:[%s1255_s1 + $0x70] sm:$0xff]  ;;  %s967_s17 = scalar_lea.vmem %s707_s2, 128  ;;  %p972_p1 = scmp.lt.s32.totalorder %s707_s2, %s707_s2 }
  0x18   :  { %v47_v46 = vld [vmem:[%s1254_s0 + $0x68] sm:$0xff]  ;;  %v88_v49 = vpack.c.bf16 %v79_v44, %v78_v43  ;;  %v81_v52 = vld [vmem:[%s1255_s1 + $0x78] sm:$0xff]  ;;  %v48_v53 = vld [vmem:[%s1254_s0 + $0x70] sm:$0xff]  ;;  %p968_p0 = scmp.ne.s32.totalorder %s707_s2, %s967_s17  ;;  %p973_p2 = scmp.lt.s32.totalorder %s967_s17, %s967_s17 }
  0x19   :  { %v56_v50 = vpack.c.bf16 %v47_v46, %v46_v45  ;;  %v49_v54 = vld [vmem:[%s1254_s0 + $0x78] sm:$0xff]  ;;  %v89_v55 = vpack.c.bf16 %v81_v52, %v80_v51  ;;  %v912_v57 = vld [vmem:[%s1259_s5 + $0x30] sm:$0xff]   ;;  %v913_v58 = vld [vmem:[%s1259_s5 + $0x28] sm:$0xff]  }
  0x1a   :  { %810 = vmatmul.mubr.msk.bf16.gmra.mxu0 %vm122_vm0, %v85_v35  ;;  %v57_v56 = vpack.c.bf16 %v49_v54, %v48_v53  ;;  %847 = vmatprep.subr.bf16.mxu0 %v912_v57  ;;  %v914_v59 = vld [vmem:[%s1259_s5 + $0x20] sm:$0xff]   ;;  %v915_v60 = vld [vmem:[%s1259_s5 + $0x18] sm:$0xff]   ;;  %v916_v61 = vld [vmem:[%s1259_s5 + $0x10] sm:$0xff]   ;;  %p974_p3 = por %p973_p2, %p972_p1 }
  0x1b   :  { %834 = vmatmul.mubr.msk.bf16.gmra.mxu1 %vm122_vm0, %v53_v36  ;;  %813 = vmatprep.mubr.msk.bf16.mxu0 %vm122_vm0, %v86_v37  ;;  %v917_v62 = vld [vmem:[%s1259_s5 + $0x8] sm:$0xff]   ;;  %v918_v63 = vld [vmem:[%s1259_s5] sm:$0xff]  }
  0x1c   :  { %837 = vmatprep.mubr.msk.bf16.mxu1 %vm122_vm0, %v54_v38  ;;  %848 = vmatpush3.bf16.msra.mxu0 %v912_v57  ;;  %v1206_v7 = vld [vmem:[%s1258_s4] ss:$0 sm:$0xff]  ;;  %p975_p4 = pnand %p974_p3, %p968_p0 }
  0x1d   :  { %849 = vmatprep.subr.bf16.mxu0 %v913_v58 }
  0x20   :  { %850 = vmatpush3.bf16.msra.mxu0 %v913_v58 }
  0x21   :  { %851 = vmatprep.subr.bf16.mxu0 %v914_v59 }
  0x22   :  { %814 = vmatmul.mubr.msk.bf16.gmra.mxu0 %vm122_vm0, %v87_v47 }
  0x23   :  { %838 = vmatmul.mubr.msk.bf16.gmra.mxu1 %vm122_vm0, %v55_v48  ;;  %817 = vmatprep.mubr.msk.bf16.mxu0 %vm122_vm0, %v88_v49 }
  0x24   :  { %841 = vmatprep.mubr.msk.bf16.mxu1 %vm122_vm0, %v56_v50  ;;  %852 = vmatpush3.bf16.msra.mxu0 %v914_v59 }
  0x25   :  { %853 = vmatprep.subr.bf16.mxu0 %v915_v60 }
  0x28   :  { %854 = vmatpush3.bf16.msra.mxu0 %v915_v60 }
  0x29   :  { %855 = vmatprep.subr.bf16.mxu0 %v916_v61 }
  0x2a   :  { %818 = vmatmul.mubr.msk.bf16.gmra.mxu0 %vm122_vm0, %v89_v55 }
  0x2b   :  { %842 = vmatmul.mubr.msk.bf16.gmra.mxu1 %vm122_vm0, %v57_v56 }
  0x2c   :  { %856 = vmatpush3.bf16.msra.mxu0 %v916_v61 }
  0x2d   :  { %857 = vmatprep.subr.bf16.mxu0 %v917_v62 }
  0x30   :  { %858 = vmatpush3.bf16.msra.mxu0 %v917_v62 }
  0x31   :  { %859 = vmatprep.subr.bf16.mxu0 %v918_v63 }
  0x34   :  { %860 = vmatpush3.bf16.msra.mxu0 %v918_v63 }
  0xd2   :  { %v807_v0 = vpop.f32.mrf.mxu0 }
  0xd3   :  { %v831_v1 = vpop.f32.mrf.mxu1 }
  0xd4   :  { %v181_v2 = vpop.f32.mrf.mxu0  ;;  %v335_v5 = vadd.f32 %v831_v1, %v807_v0 }
  0xd5   :  { %v326_v3 = vpop.f32.mrf.mxu1 }
  0xd6   :  { %v808_v4 = vpop.f32.mrf.mxu0  ;;  %v327_v8 = vadd.f32 %v326_v3, %v181_v2  ;;  %v398_v15 = vadd.f32 %v1206_v7, %v335_v5 }
  0xd7   :  { %v832_v6 = vpop.f32.mrf.mxu1 }
  0xd8   :  { %v338_v9 = vadd.f32 %v832_v6, %v808_v4  ;;  %v184_v10 = vpop.f32.mrf.mxu0  ;;  %v396_v17 = vadd.f32 %v1206_v7, %v327_v8 }
  0xd9   :  { %v329_v11 = vpop.f32.mrf.mxu1 }
  0xda   :  { %v399_v12 = vadd.f32 %v1206_v7, %v338_v9  ;;  %v330_v13 = vadd.f32 %v329_v11, %v184_v10  ;;  %v811_v14 = vpop.f32.mrf.mxu0 }
  0xdb   :  { %v835_v16 = vpop.f32.mrf.mxu1 }
  0xdc   :  { %v397_v18 = vadd.f32 %v1206_v7, %v330_v13  ;;  %v351_v19 = vadd.f32 %v835_v16, %v811_v14  ;;  %v197_v20 = vpop.f32.mrf.mxu0  ;;  %v413_v21 = vpack.c.bf16 %v399_v12, %v398_v15 }
  0xdd   :  { %v342_v22 = vpop.f32.mrf.mxu1 }
  0xde   :  { %v412_v23 = vpack.c.bf16 %v397_v18, %v396_v17  ;;  %v343_v24 = vadd.f32 %v342_v22, %v197_v20  ;;  %v812_v25 = vpop.f32.mrf.mxu0  ;;  %v402_v27 = vadd.f32 %v1206_v7, %v351_v19 }
  0xdf   :  { %v836_v26 = vpop.f32.mrf.mxu1 }
  0xe0   :  { %919 = vtanh.bf16 %v412_v23  ;;  %v354_v28 = vadd.f32 %v836_v26, %v812_v25  ;;  %v200_v29 = vpop.f32.mrf.mxu0  ;;  %v400_v31 = vadd.f32 %v1206_v7, %v343_v24 }
  0xe1   :  { %921 = vtanh.bf16 %v413_v21  ;;  %v345_v30 = vpop.f32.mrf.mxu1 }
  0xe2   :  { %v403_v32 = vadd.f32 %v1206_v7, %v354_v28  ;;  %v346_v33 = vadd.f32 %v345_v30, %v200_v29  ;;  %v815_v34 = vpop.f32.mrf.mxu0 }
  0xe3   :  { %v839_v35 = vpop.f32.mrf.mxu1 }
  0xe4   :  { %v415_v36 = vpack.c.bf16 %v403_v32, %v402_v27  ;;  %v401_v37 = vadd.f32 %v1206_v7, %v346_v33  ;;  %v367_v38 = vadd.f32 %v839_v35, %v815_v34  ;;  %v213_v39 = vpop.f32.mrf.mxu0 }
  0xe5   :  { %v358_v40 = vpop.f32.mrf.mxu1 }
  0xe6   :  { %v414_v41 = vpack.c.bf16 %v401_v37, %v400_v31  ;;  %v359_v42 = vadd.f32 %v358_v40, %v213_v39  ;;  %v816_v43 = vpop.f32.mrf.mxu0  ;;  %923 = vtanh.bf16 %v415_v36  ;;  %v406_v45 = vadd.f32 %v1206_v7, %v367_v38 }
  0xe7   :  { %v840_v44 = vpop.f32.mrf.mxu1 }
  0xe8   :  { %925 = vtanh.bf16 %v414_v41  ;;  %v370_v46 = vadd.f32 %v840_v44, %v816_v43  ;;  %v216_v47 = vpop.f32.mrf.mxu0  ;;  %v404_v49 = vadd.f32 %v1206_v7, %v359_v42 }
  0xe9   :  { %v361_v48 = vpop.f32.mrf.mxu1 }
  0xea   :  { %v407_v50 = vadd.f32 %v1206_v7, %v370_v46  ;;  %v362_v51 = vadd.f32 %v361_v48, %v216_v47  ;;  %v819_v52 = vpop.f32.mrf.mxu0 }
  0xeb   :  { %v843_v53 = vpop.f32.mrf.mxu1 }
  0xec   :  { %v417_v54 = vpack.c.bf16 %v407_v50, %v406_v45  ;;  %v405_v55 = vadd.f32 %v1206_v7, %v362_v51  ;;  %v383_v56 = vadd.f32 %v843_v53, %v819_v52  ;;  %v229_v57 = vpop.f32.mrf.mxu0 }
  0xed   :  { %v374_v58 = vpop.f32.mrf.mxu1 }
  0xee   :  { %v920_v59 = vpop.eup %919  ;;  %v416_v60 = vpack.c.bf16 %v405_v55, %v404_v49  ;;  %v375_v61 = vadd.f32 %v374_v58, %v229_v57  ;;  %v820_v62 = vpop.f32.mrf.mxu0  ;;  %927 = vtanh.bf16 %v417_v54  ;;  %v410_v1 = vadd.f32 %v1206_v7, %v383_v56 }
  0xef   :  { %v922_v63 = vpop.eup %921  ;;  %861 = vmatprep.mubr.bf16.mxu0 %v920_v59  ;;  %v844_v0 = vpop.f32.mrf.mxu1 }
  0xf0   :  { %929 = vtanh.bf16 %v416_v60  ;;  %862 = vmatmul.mubr.bf16.vlgmr.msra.gmra.mxu0 %v922_v63  ;;  %v386_v2 = vadd.f32 %v844_v0, %v820_v62  ;;  %v232_v3 = vpop.f32.mrf.mxu0  ;;  %v408_v5 = vadd.f32 %v1206_v7, %v375_v61 }
  0xf1   :  { %v377_v4 = vpop.f32.mrf.mxu1 }
  0xf2   :  { %v411_v6 = vadd.f32 %v1206_v7, %v386_v2  ;;  %v378_v8 = vadd.f32 %v377_v4, %v232_v3  ;;  %v653_v3 = vld [vmem:[%s1262_s8] sm:$0xff]  ;;  %v991_v4 = vmov 0  }
  0xf3   :  { %901 = vset.pattern.permute.xlu1 %v991_v4 }
  0xf4   :  { %v419_v9 = vpack.c.bf16 %v411_v6, %v410_v1  ;;  %v409_v10 = vadd.f32 %v1206_v7, %v378_v8  ;;  %v924_v11 = vpop.eup %923  ;;  %v1227_v7 = vld [vmem:[%s1260_s6] ss:$0 sm:$0xff]  ;;  %v989_v1 = vmov 0.0   ;;  %656 = vperm.xlu1 %901, %v653_v3  }
  0xf5   :  { %877 = vmatprep.subr.bf16.mxu1 %v989_v1  ;;  %893 = vmatprep.mubr.msk.bf16.mxu1 %vm990_vm1, %v989_v1 }
  0xf6   :  { %v926_v12 = vpop.eup %925  ;;  %v418_v13 = vpack.c.bf16 %v409_v10, %v408_v5  ;;  %931 = vtanh.bf16 %v419_v9 }
  0xf7   :  { %865 = vmatprep.mubr.bf16.mxu0 %v926_v12 }
  0xf8   :  { %866 = vmatmul.mubr.bf16.gmra.mxu0 %v924_v11  ;;  %933 = vtanh.bf16 %v418_v13 }
  0xfc   :  { %v928_v14 = vpop.eup %927 }
  0xfe   :  { %v930_v15 = vpop.eup %929 }
  0xff   :  { %869 = vmatprep.mubr.bf16.mxu0 %v930_v15 }
 0x100   :  { %870 = vmatmul.mubr.bf16.gmra.mxu0 %v928_v14 }
 0x104   :  { %v932_v16 = vpop.eup %931 }
 0x106   :  { %v934_v17 = vpop.eup %933 }
 0x107   :  { %873 = vmatprep.mubr.bf16.mxu0 %v934_v17 }
 0x108   :  { %874 = vmatmul.mubr.bf16.gmra.mxu0 %v932_v16 }
 0x1b0   :  { %v863_v18 = vpop.f32.mrf.mxu0 }
 0x1b1   :  { %v542_v25 = vadd.f32 %v863_v18, %v1227_v7 }
 0x1b2   :  { %v533_v19 = vpop.f32.mrf.mxu0 }
 0x1b3   :  { %v534_v20 = vadd.f32 %v1227_v7, %v533_v19 }
 0x1b4   :  { %v864_v21 = vpop.f32.mrf.mxu0 }
 0x1b5   :  { %935 = vtanh.f32 %v534_v20  ;;  %v545_v27 = vadd.f32 %v864_v21, %v1227_v7 }
 0x1b6   :  { %v536_v22 = vpop.f32.mrf.mxu0 }
 0x1b7   :  { %v537_v23 = vadd.f32 %v1227_v7, %v536_v22 }
 0x1b8   :  { %v867_v24 = vpop.f32.mrf.mxu0 }
 0x1b9   :  { %937 = vtanh.f32 %v537_v23  ;;  %v558_v35 = vadd.f32 %v867_v24, %v1227_v7 }
 0x1ba   :  { %v549_v26 = vpop.f32.mrf.mxu0  ;;  %939 = vtanh.f32 %v542_v25 }
 0x1bb   :  { %941 = vtanh.f32 %v545_v27  ;;  %v550_v29 = vadd.f32 %v1227_v7, %v549_v26 }
 0x1bc   :  { %v868_v28 = vpop.f32.mrf.mxu0 }
 0x1bd   :  { %943 = vtanh.f32 %v550_v29  ;;  %v561_v38 = vadd.f32 %v868_v28, %v1227_v7  ;;  %v652_v29 = vld [vmem:[%s1261_s7] sm:$0xf] }
 0x1be   :  { %v552_v31 = vpop.f32.mrf.mxu0 }
 0x1bf   :  { %v553_v32 = vadd.f32 %v1227_v7, %v552_v31 }
 0x1c0   :  { %v871_v34 = vpop.f32.mrf.mxu0 }
 0x1c1   :  { %945 = vtanh.f32 %v553_v32  ;;  %v574_v47 = vadd.f32 %v871_v34, %v1227_v7 }
 0x1c2   :  { %v936_v30 = vpop.eup %935  ;;  %v565_v37 = vpop.f32.mrf.mxu0  ;;  %947 = vtanh.f32 %v558_v35 }
 0x1c3   :  { %612 = vxpose.xlu0.b32.start [1/16] %v936_v30, 128  ;;  %949 = vtanh.f32 %v561_v38  ;;  %v566_v41 = vadd.f32 %v1227_v7, %v565_v37  ;;  %v657_v30 = vpop.permute.xlu1 %656 }
 0x1c4   :  { %v872_v40 = vpop.f32.mrf.mxu0 }
 0x1c5   :  { %951 = vtanh.f32 %v566_v41  ;;  %v577_v50 = vadd.f32 %v872_v40, %v1227_v7 }
 0x1c6   :  { %v938_v33 = vpop.eup %937  ;;  %v568_v43 = vpop.f32.mrf.mxu0 }
 0x1c7   :  { %613 = vxpose.xlu0.b32.cont [2/16] %v938_v33, 128  ;;  %v940_v36 = vpop.eup %939  ;;  %v569_v44 = vadd.f32 %v1227_v7, %v568_v43 }
 0x1c8   :  { %v942_v39 = vpop.eup %941  ;;  %v875_v46 = vpop.f32.mrf.mxu0 }
 0x1c9   :  { %953 = vtanh.f32 %v569_v44  ;;  %v590_v58 = vadd.f32 %v875_v46, %v1227_v7 }
 0x1ca   :  { %v944_v42 = vpop.eup %943  ;;  %v581_v49 = vpop.f32.mrf.mxu0  ;;  %955 = vtanh.f32 %v574_v47 }
 0x1cb   :  { %614 = vxpose.xlu0.b32.cont [3/16] %v940_v36, 128  ;;  %957 = vtanh.f32 %v577_v50  ;;  %v582_v53 = vadd.f32 %v1227_v7, %v581_v49 }
 0x1cc   :  { %v876_v52 = vpop.f32.mrf.mxu0 }
 0x1cd   :  { %959 = vtanh.f32 %v582_v53  ;;  %v593_v60 = vadd.f32 %v876_v52, %v1227_v7 }
 0x1ce   :  { %v946_v45 = vpop.eup %945  ;;  %v584_v55 = vpop.f32.mrf.mxu0 }
 0x1cf   :  { %615 = vxpose.xlu0.b32.cont [4/16] %v942_v39, 128  ;;  %v948_v48 = vpop.eup %947  ;;  %v585_v56 = vadd.f32 %v1227_v7, %v584_v55 }
 0x1d0   :  { %v950_v51 = vpop.eup %949 }
 0x1d1   :  { %961 = vtanh.f32 %v585_v56 }
 0x1d2   :  { %v952_v54 = vpop.eup %951  ;;  %963 = vtanh.f32 %v590_v58 }
 0x1d3   :  { %616 = vxpose.xlu0.b32.cont [5/16] %v944_v42, 128  ;;  %965 = vtanh.f32 %v593_v60 }
 0x1d6   :  { %v954_v57 = vpop.eup %953 }
 0x1d7   :  { %617 = vxpose.xlu0.b32.cont [6/16] %v946_v45, 128  ;;  %v956_v59 = vpop.eup %955 }
 0x1d8   :  { %v958_v61 = vpop.eup %957 }
 0x1da   :  { %v960_v62 = vpop.eup %959 }
 0x1db   :  { %618 = vxpose.xlu0.b32.cont [7/16] %v948_v48, 128 }
 0x1de   :  { %v962_v63 = vpop.eup %961 }
 0x1df   :  { %619 = vxpose.xlu0.b32.cont [8/16] %v950_v51, 128  ;;  %v964_v0 = vpop.eup %963 }
 0x1e0   :  { %v966_v2 = vpop.eup %965 }
 0x1e3   :  { %620 = vxpose.xlu0.b32.cont [9/16] %v952_v54, 128 }
 0x1e7   :  { %621 = vxpose.xlu0.b32.cont [10/16] %v954_v57, 128 }
 0x1eb   :  { %622 = vxpose.xlu0.b32.cont [11/16] %v956_v59, 128 }
 0x1ef   :  { %623 = vxpose.xlu0.b32.cont [12/16] %v958_v61, 128 }
 0x1f3   :  { %624 = vxpose.xlu0.b32.cont [13/16] %v960_v62, 128 }
 0x1f7   :  { %625 = vxpose.xlu0.b32.cont [14/16] %v962_v63, 128 }
 0x1fb   :  { %626 = vxpose.xlu0.b32.cont [15/16] %v964_v0, 128 }
 0x1ff   :  { %627 = vxpose.xlu0.b32.end [16/16] %v966_v2, 128 }
 0x228   :  { %902 = vset.pattern.permute.xlu0 %v991_v4 }
 0x23f   :  { %v628_v5 = vpop.trf.xlu0 }
 0x243   :  { %v629_v6 = vpop.trf.xlu0 }
 0x244   :  { %v644_v8 = vpack.c.bf16 %v629_v6, %v628_v5 }
 0x247   :  { %v630_v9 = vpop.trf.xlu0 }
 0x24b   :  { %v631_v10 = vpop.trf.xlu0 }
 0x24c   :  { %v645_v11 = vpack.c.bf16 %v631_v10, %v630_v9 }
 0x24f   :  { %v632_v12 = vpop.trf.xlu0 }
 0x253   :  { %v633_v13 = vpop.trf.xlu0 }
 0x254   :  { %v646_v28 = vpack.c.bf16 %v633_v13, %v632_v12 }
 0x257   :  { %v634_v14 = vpop.trf.xlu0 }
 0x25b   :  { %v635_v15 = vpop.trf.xlu0 }
 0x25c   :  { %v647_v27 = vpack.c.bf16 %v635_v15, %v634_v14 }
 0x25f   :  { %v636_v16 = vpop.trf.xlu0 }
 0x263   :  { %v637_v17 = vpop.trf.xlu0 }
 0x264   :  { %v648_v26 = vpack.c.bf16 %v637_v17, %v636_v16 }
 0x267   :  { %v638_v18 = vpop.trf.xlu0 }
 0x26b   :  { %v639_v7 = vpop.trf.xlu0 }
 0x26c   :  { %v649_v25 = vpack.c.bf16 %v639_v7, %v638_v18 }
 0x26f   :  { %v640_v19 = vpop.trf.xlu0 }
 0x273   :  { %v641_v20 = vpop.trf.xlu0 }
 0x274   :  { %v650_v24 = vpack.c.bf16 %v641_v20, %v640_v19 }
 0x277   :  { %v642_v21 = vpop.trf.xlu0 }
 0x27b   :  { %v643_v22 = vpop.trf.xlu0 }
 0x27c   :  { %v651_v23 = vpack.c.bf16 %v643_v22, %v642_v21 }
 0x27e   :  { %878 = vmatpush3.bf16.msra.mxu1 %v651_v23 }
 0x27f   :  { %879 = vmatprep.subr.bf16.mxu1 %v989_v1 }
 0x282   :  { %880 = vmatpush3.bf16.msra.mxu1 %v650_v24 }
 0x283   :  { %881 = vmatprep.subr.bf16.mxu1 %v989_v1 }
 0x286   :  { %882 = vmatpush3.bf16.msra.mxu1 %v649_v25 }
 0x287   :  { %883 = vmatprep.subr.bf16.mxu1 %v989_v1 }
 0x28a   :  { %884 = vmatpush3.bf16.msra.mxu1 %v648_v26 }
 0x28b   :  { %885 = vmatprep.subr.bf16.mxu1 %v989_v1 }
 0x28e   :  { %886 = vmatpush3.bf16.msra.mxu1 %v647_v27 }
 0x28f   :  { %887 = vmatprep.subr.bf16.mxu1 %v989_v1 }
 0x292   :  { %888 = vmatpush3.bf16.msra.mxu1 %v646_v28 }
 0x293   :  { %889 = vmatprep.subr.bf16.mxu1 %v989_v1 }
 0x296   :  { %890 = vmatpush3.bf16.msra.mxu1 %v645_v11 }
 0x297   :  { %891 = vmatprep.subr.bf16.mxu1 %v989_v1 }
 0x29a   :  { %892 = vmatpush3.bf16.msra.mxu1 %v644_v8 }
 0x29d   :  { %894 = vmatmul.mubr.bf16.vlgmr.msra.gmra.mxu1 %v652_v29 }
 0x35d   :  { %v693_v31 = vpop.f32.mrf.mxu1 }
 0x35e   :  { %v694_v32 = vadd.f32 %v693_v31, %v657_v30 }
 0x35f   :  { %v895_v33 = vpop.f32.mrf.mxu1 }
 0x360   :  { %699 = vst [vmem:[#allocation2] sm:$0xff] %v694_v32 }
 0x361   :  { %v696_v34 = vpop.f32.mrf.mxu1 }
 0x362   :  { %978 = shalt.err (!%p975_p4)
}
 0x363   :  { %709 = dma.vmem_to_hbm [thread:$0]  %s707_s2, 128, %s1263_s9, [#allocation3]   ;;  %v896_v35 = vpop.f32.mrf.mxu1 }
 0x364   :  { %987 = dma.done.wait [#allocation3], 128  }
 0x365   :  { %988 = vsyncadd [#allocation3], 4294967168 }
 0x366   :  { %713 = vsyncpa [#allocation3], 1 }

</bundles_post_ra>
